<compile_context>
chip_gen: v5e
topology: v5e:2x2
jax: 0.10.0
libtpu: 0.0.40
codegen_flags: <defaults>
</compile_context>

<pallas_src>
import functools

import numpy as np
import jax
import jax.numpy as jnp
from jax.experimental import pallas as pl
from jax.experimental.pallas import tpu as pltpu


# ----------------------------------------------------------------------------
# Bilinear interpolation matrix (PyTorch F.interpolate, mode='bilinear',
# align_corners=False): resize along one axis == matmul with this matrix.
# ----------------------------------------------------------------------------
def _bilinear_matrix(out_size, in_size):
    scale = in_size / out_size
    dst = np.arange(out_size, dtype=np.float64)
    src = (dst + 0.5) * scale - 0.5
    src = np.maximum(src, 0.0)                      # PyTorch clamps negatives to 0
    i0 = np.minimum(np.floor(src).astype(np.int64), in_size - 1)
    i1 = np.minimum(i0 + 1, in_size - 1)
    w1 = (src - i0).astype(np.float32)
    w0 = (1.0 - w1).astype(np.float32)
    mat = np.zeros((out_size, in_size), dtype=np.float32)
    rows = dst.astype(np.int64)
    np.add.at(mat, (rows, i0), w0)
    np.add.at(mat, (rows, i1), w1)
    return mat


def _largest_divisor_leq(n, cap):
    for t in range(min(n, cap), 0, -1):
        if n % t == 0:
            return t
    return 1


def _pick_lane_tile(total, cap=32768):
    """Largest multiple-of-128 divisor of `total` <= cap (or `total` itself)."""
    if total <= cap:
        return total
    t = cap - (cap % 128)
    while t >= 128:
        if total % t == 0:
            return t
        t -= 128
    return total


# ----------------------------------------------------------------------------
# Stage 1: bilinear resize.  x block is (c_blk*h_in, w_in); the W-pass is one
# channel-batched matmul, the H-pass is one matmul per channel (aligned row
# slices of the W-pass result; no halo, no unaligned stores).
# ----------------------------------------------------------------------------
def _resize_kernel(x_ref, wh_ref, wwt_ref, r_ref, *, c_blk, h_in):
    xb = x_ref[0]                                           # (c_blk*h_in, w_in)
    # W-pass, batched over all channels in the block (one MXU matmul).
    u = jnp.dot(xb, wwt_ref[...], preferred_element_type=jnp.float32)
    wh = wh_ref[...]                                        # (h_out, h_in)
    for k in range(c_blk):
        rc = jnp.dot(wh, u[k * h_in:(k + 1) * h_in, :],
                     preferred_element_type=jnp.float32)    # (h_out, w_out)
        r_ref[0, k] = rc.astype(r_ref.dtype)


# ----------------------------------------------------------------------------
# Stage 2: 3x3 conv (padding=1) + bias as 9 accumulated MXU matmuls on the
# flattened (c_in, h*w) slab, plus per-(sample, channel) BN partial sums.
# ----------------------------------------------------------------------------
def _conv_kernel(r_ref, w_ref, b_ref, y_ref, s1_ref, s2_ref, rp_ref,
                 *, c_in, co_blk, h_out, w_out, pad):
    hw = h_out * w_out

    # Flat, zero-halo-padded copy of the resized sample (bf16).  The +/-1 row
    # and column conv shifts become lane-offset reads of this buffer.
    rp_ref[:, :pad] = jnp.zeros((c_in, pad), rp_ref.dtype)
    rp_ref[:, pad + hw:] = jnp.zeros((c_in, pad), rp_ref.dtype)
    rp_ref[:, pad:pad + hw] = r_ref[0]

    # Column-validity masks for the dj = -1 / +1 taps (dj = 0 needs none);
    # row (di) out-of-range positions land in the zero halo automatically.
    col = jax.lax.broadcasted_iota(jnp.int32, (1, hw), 1) % w_out
    mask_m = col >= 1                   # dj = -1 valid
    mask_p = col <= (w_out - 2)         # dj = +1 valid

    acc = jnp.zeros((co_blk, hw), jnp.float32)
    for a in range(3):                  # di = a - 1
        for b in range(3):              # dj = b - 1
            d = (a - 1) * w_out + (b - 1)
            tap = rp_ref[:, pad + d:pad + d + hw]           # (c_in, hw) bf16
            if b == 0:
                tap = jnp.where(mask_m, tap, 0.0)
            elif b == 2:
                tap = jnp.where(mask_p, tap, 0.0)
            acc = acc + jnp.dot(w_ref[a * 3 + b], tap,
                                preferred_element_type=jnp.float32)

    y = acc + b_ref[...]                                    # bias added once
    y_ref[0] = y
    s1_ref[0] = jnp.sum(y, axis=1, keepdims=True)           # BN partial sums
    s2_ref[0] = jnp.sum(y * y, axis=1, keepdims=True)


# ----------------------------------------------------------------------------
# Stage 3: BatchNorm (precomputed per-channel scale/shift) + ReLU.
# ----------------------------------------------------------------------------
def _bn_relu_kernel(y_ref, sc_ref, sh_ref, o_ref):
    o_ref[0] = jnp.maximum(y_ref[0] * sc_ref[...] + sh_ref[...], 0.0)


# ----------------------------------------------------------------------------
# Wrapper
# ----------------------------------------------------------------------------
def upscale_conv_forward(x_nchw, size, conv_w, conv_b, bn_gamma, bn_beta, *, eps=1e-5):
    n, c_in, h_in, w_in = x_nchw.shape
    h_out, w_out = size
    c_out = conv_w.shape[0]
    hw = h_out * w_out

    # Host-side constants.
    wh = jnp.asarray(_bilinear_matrix(h_out, h_in))                 # (h_out, h_in) f32
    wwt = jnp.asarray(_bilinear_matrix(w_out, w_in)).T              # (w_in, w_out) f32
    # Conv weight per tap (tap = (di+1)*3 + (dj+1)), bf16 for the MXU fast path.
    wtaps = conv_w.astype(jnp.bfloat16).transpose(2, 3, 0, 1).reshape(9, c_out, c_in)
    bias = conv_b.astype(jnp.float32).reshape(c_out, 1)

    x3 = x_nchw.astype(jnp.float32).reshape(n, c_in * h_in, w_in)   # metadata reshape

    # ---- Stage 1: bilinear resize -> bf16 (n, c_in, h_out, w_out) ----------
    c_blk = _largest_divisor_leq(c_in, 8)
    r = pl.pallas_call(
        functools.partial(_resize_kernel, c_blk=c_blk, h_in=h_in),
        out_shape=jax.ShapeDtypeStruct((n, c_in, h_out, w_out), jnp.bfloat16),
        grid=(n, c_in // c_blk),
        in_specs=[
            pl.BlockSpec((1, c_blk * h_in, w_in), lambda s, cb: (s, cb, 0)),
            pl.BlockSpec((h_out, h_in), lambda s, cb: (0, 0)),
            pl.BlockSpec((w_in, w_out), lambda s, cb: (0, 0)),
        ],
        out_specs=pl.BlockSpec((1, c_blk, h_out, w_out), lambda s, cb: (s, cb, 0, 0)),
        compiler_params=pltpu.CompilerParams(
            dimension_semantics=("parallel", "parallel")),
    )(x3, wh, wwt)

    r_flat = r.reshape(n, c_in, hw)     # free, metadata-only (HBM is row-major)

    # ---- Stage 2: conv3x3 + bias (+ BN partial sums), lane-dense output ----
    co_blk = _largest_divisor_leq(c_out, 32)
    pad = ((w_out + 1 + 127) // 128) * 128      # halo >= w_out+1, lane-aligned
    conv_out, s1, s2 = pl.pallas_call(
        functools.partial(_conv_kernel, c_in=c_in, co_blk=co_blk,
                          h_out=h_out, w_out=w_out, pad=pad),
        out_shape=(jax.ShapeDtypeStruct((n, c_out, hw), jnp.float32),
                   jax.ShapeDtypeStruct((n, c_out, 1), jnp.float32),
                   jax.ShapeDtypeStruct((n, c_out, 1), jnp.float32)),
        grid=(n, c_out // co_blk),
        in_specs=[
            pl.BlockSpec((1, c_in, hw), lambda s, oc: (s, 0, 0)),
            pl.BlockSpec((9, co_blk, c_in), lambda s, oc: (0, oc, 0)),
            pl.BlockSpec((co_blk, 1), lambda s, oc: (oc, 0)),
        ],
        out_specs=(
            pl.BlockSpec((1, co_blk, hw), lambda s, oc: (s, oc, 0)),
            pl.BlockSpec((1, co_blk, 1), lambda s, oc: (s, oc, 0)),
            pl.BlockSpec((1, co_blk, 1), lambda s, oc: (s, oc, 0)),
        ),
        scratch_shapes=[pltpu.VMEM((c_in, hw + 2 * pad), jnp.bfloat16)],
        compiler_params=pltpu.CompilerParams(
            dimension_semantics=("parallel", "parallel")),
    )(r_flat.astype(jnp.bfloat16), wtaps, bias)

    # ---- BatchNorm statistics (training-mode, biased variance): tiny math --
    cnt = float(n * hw)
    mean = jnp.sum(s1[:, :, 0], axis=0) / cnt
    ex2 = jnp.sum(s2[:, :, 0], axis=0) / cnt
    var = ex2 - mean * mean
    scale = (bn_gamma.astype(jnp.float32) / jnp.sqrt(var + eps)).reshape(c_out, 1)
    shift = bn_beta.astype(jnp.float32).reshape(c_out, 1) - mean.reshape(c_out, 1) * scale

    # ---- Stage 3: normalize + ReLU, tiled over (batch, lane tiles) ---------
    hw_t = _pick_lane_tile(hw)
    out = pl.pallas_call(
        _bn_relu_kernel,
        out_shape=jax.ShapeDtypeStruct((n, c_out, hw), jnp.float32),
        grid=(n, hw // hw_t),
        in_specs=[
            pl.BlockSpec((1, c_out, hw_t), lambda s, m: (s, 0, m)),
            pl.BlockSpec((c_out, 1), lambda s, m: (0, 0)),
            pl.BlockSpec((c_out, 1), lambda s, m: (0, 0)),
        ],
        out_specs=pl.BlockSpec((1, c_out, hw_t), lambda s, m: (s, 0, m)),
        compiler_params=pltpu.CompilerParams(
            dimension_semantics=("parallel", "parallel")),
    )(conv_out, scale, shift)

    return out.reshape(n, c_out, h_out, w_out)   # metadata-only -> NCHW


# ----------------------------------------------------------------------------
# Pure-JAX f32 reference (same math) for a numerical sanity check.
# ----------------------------------------------------------------------------
def _reference(x, size, conv_w, conv_b, gamma, beta, eps=1e-5):
    h_out, w_out = size
    _, _, h_in, w_in = x.shape
    wh = jnp.asarray(_bilinear_matrix(h_out, h_in))
    ww = jnp.asarray(_bilinear_matrix(w_out, w_in))
    r = jnp.einsum('op,ncpq->ncoq', wh, x, precision=jax.lax.Precision.HIGHEST)
    r = jnp.einsum('oq,ncpq->ncpo', ww, r, precision=jax.lax.Precision.HIGHEST)
    y = jax.lax.conv_general_dilated(r, conv_w, (1, 1), ((1, 1), (1, 1)),
                                     precision=jax.lax.Precision.HIGHEST)
    y = y + conv_b[None, :, None, None]
    mean = y.mean(axis=(0, 2, 3), keepdims=True)
    var = ((y - mean) ** 2).mean(axis=(0, 2, 3), keepdims=True)
    yn = (y - mean) / jnp.sqrt(var + eps)
    yn = yn * gamma[None, :, None, None] + beta[None, :, None, None]
    return jnp.maximum(yn, 0.0)


if __name__ == "__main__":
    key = jax.random.PRNGKey(0)
    k1, k2, k3, k4, k5 = jax.random.split(key, 5)

    N, C_IN, H_IN, W_IN = 2, 4, 16, 16
    C_OUT = 8
    SIZE = (32, 32)

    x = jax.random.normal(k1, (N, C_IN, H_IN, W_IN), dtype=jnp.float32)
    conv_w = 0.1 * jax.random.normal(k2, (C_OUT, C_IN, 3, 3), dtype=jnp.float32)
    conv_b = 0.1 * jax.random.normal(k3, (C_OUT,), dtype=jnp.float32)
    bn_gamma = 1.0 + 0.1 * jax.random.normal(k4, (C_OUT,), dtype=jnp.float32)
    bn_beta = 0.1 * jax.random.normal(k5, (C_OUT,), dtype=jnp.float32)

    out = upscale_conv_forward(x, SIZE, conv_w, conv_b, bn_gamma, bn_beta)
    out = jax.block_until_ready(out)

    ref = _reference(x, SIZE, conv_w, conv_b, bn_gamma, bn_beta)
    # bf16 conv weights/activations on the MXU (f32 accumulation); after the
    # unit-variance BatchNorm normalization the expected error is ~1e-2.
    np.testing.assert_allclose(np.asarray(out), np.asarray(ref), atol=3e-2, rtol=3e-2)

    print("KERNEL_OK")
</pallas_src>

<mosaic_0001>
module attributes {stable_mosaic.version = 11 : i64} {
  func.func @_resize_kernel(%arg0: i32, %arg1: i32, %arg2: memref<1x64x16xf32, #tpu.memory_space<vmem>>, %arg3: memref<32x16xf32, #tpu.memory_space<vmem>>, %arg4: memref<16x32xf32, #tpu.memory_space<vmem>>, %arg5: memref<1x4x32x32xbf16, #tpu.memory_space<vmem>>) attributes {dimension_semantics = [#tpu.dimension_semantics<parallel>, #tpu.dimension_semantics<parallel>], iteration_bounds = array<i64: 2, 1>, scalar_prefetch = 0 : i64, scratch_operands = 0 : i64, tpu.core_type = #tpu.core_type<tc>, window_params = [{transform_indices = @transform_0, window_bounds = array<i64: 1, 64, 16>}, {pipeline_mode = #tpu.pipeline_mode<synchronous>, transform_indices = @transform_1, window_bounds = array<i64: 32, 16>}, {pipeline_mode = #tpu.pipeline_mode<synchronous>, transform_indices = @transform_2, window_bounds = array<i64: 16, 32>}, {transform_indices = @transform_3, window_bounds = array<i64: 1, 4, 32, 32>}]} {
    %c0 = arith.constant 0 : index
    %c0_0 = arith.constant 0 : index
    %c0_1 = arith.constant 0 : index
    %0 = vector.load %arg2[%c0, %c0_0, %c0_1] : memref<1x64x16xf32, #tpu.memory_space<vmem>>, vector<1x64x16xf32>
    %1 = vector.shape_cast %0 : vector<1x64x16xf32> to vector<64x16xf32>
    %c0_2 = arith.constant 0 : index
    %c0_3 = arith.constant 0 : index
    %2 = vector.load %arg4[%c0_2, %c0_3] : memref<16x32xf32, #tpu.memory_space<vmem>>, vector<16x32xf32>
    %cst = arith.constant dense<0.000000e+00> : vector<64x32xf32>
    %3 = tpu.matmul %1, %2, %cst {dimension_numbers = #tpu.dot_dimension_numbers<[1], [0], [0], [1], [0, 0, 1, 1], [], []>} : vector<64x16xf32>, vector<16x32xf32>, vector<64x32xf32> -> vector<64x32xf32>
    %c0_4 = arith.constant 0 : index
    %c0_5 = arith.constant 0 : index
    %4 = vector.load %arg3[%c0_4, %c0_5] : memref<32x16xf32, #tpu.memory_space<vmem>>, vector<32x16xf32>
    %5 = vector.extract_strided_slice %3 {offsets = [0, 0], sizes = [16, 32], strides = [1, 1]} : vector<64x32xf32> to vector<16x32xf32>
    %cst_6 = arith.constant dense<0.000000e+00> : vector<32x32xf32>
    %6 = tpu.matmul %4, %5, %cst_6 {dimension_numbers = #tpu.dot_dimension_numbers<[1], [0], [0], [1], [0, 0, 1, 1], [], []>} : vector<32x16xf32>, vector<16x32xf32>, vector<32x32xf32> -> vector<32x32xf32>
    %7 = arith.truncf %6 : vector<32x32xf32> to vector<32x32xbf16>
    %c0_7 = arith.constant 0 : index
    %c0_8 = arith.constant 0 : index
    %c0_9 = arith.constant 0 : index
    %c0_10 = arith.constant 0 : index
    %8 = vector.load %arg5[%c0_7, %c0_8, %c0_9, %c0_10] : memref<1x4x32x32xbf16, #tpu.memory_space<vmem>>, vector<1x1x32x32xbf16>
    %9 = vector.shape_cast %8 : vector<1x1x32x32xbf16> to vector<32x32xbf16>
    %10 = vector.shape_cast %7 : vector<32x32xbf16> to vector<1x1x32x32xbf16>
    tpu.vector_store %arg5[%c0_7, %c0_8, %c0_9, %c0_10], %10 {strides = array<i32>} : memref<1x4x32x32xbf16, #tpu.memory_space<vmem>>, vector<1x1x32x32xbf16>,
    %11 = vector.extract_strided_slice %3 {offsets = [16, 0], sizes = [16, 32], strides = [1, 1]} : vector<64x32xf32> to vector<16x32xf32>
    %cst_11 = arith.constant dense<0.000000e+00> : vector<32x32xf32>
    %12 = tpu.matmul %4, %11, %cst_11 {dimension_numbers = #tpu.dot_dimension_numbers<[1], [0], [0], [1], [0, 0, 1, 1], [], []>} : vector<32x16xf32>, vector<16x32xf32>, vector<32x32xf32> -> vector<32x32xf32>
    %13 = arith.truncf %12 : vector<32x32xf32> to vector<32x32xbf16>
    %c0_12 = arith.constant 0 : index
    %c1 = arith.constant 1 : index
    %c0_13 = arith.constant 0 : index
    %c0_14 = arith.constant 0 : index
    %14 = vector.load %arg5[%c0_12, %c1, %c0_13, %c0_14] : memref<1x4x32x32xbf16, #tpu.memory_space<vmem>>, vector<1x1x32x32xbf16>
    %15 = vector.shape_cast %14 : vector<1x1x32x32xbf16> to vector<32x32xbf16>
    %16 = vector.shape_cast %13 : vector<32x32xbf16> to vector<1x1x32x32xbf16>
    tpu.vector_store %arg5[%c0_12, %c1, %c0_13, %c0_14], %16 {strides = array<i32>} : memref<1x4x32x32xbf16, #tpu.memory_space<vmem>>, vector<1x1x32x32xbf16>,
    %17 = vector.extract_strided_slice %3 {offsets = [32, 0], sizes = [16, 32], strides = [1, 1]} : vector<64x32xf32> to vector<16x32xf32>
    %cst_15 = arith.constant dense<0.000000e+00> : vector<32x32xf32>
    %18 = tpu.matmul %4, %17, %cst_15 {dimension_numbers = #tpu.dot_dimension_numbers<[1], [0], [0], [1], [0, 0, 1, 1], [], []>} : vector<32x16xf32>, vector<16x32xf32>, vector<32x32xf32> -> vector<32x32xf32>
    %19 = arith.truncf %18 : vector<32x32xf32> to vector<32x32xbf16>
    %c0_16 = arith.constant 0 : index
    %c2 = arith.constant 2 : index
    %c0_17 = arith.constant 0 : index
    %c0_18 = arith.constant 0 : index
    %20 = vector.load %arg5[%c0_16, %c2, %c0_17, %c0_18] : memref<1x4x32x32xbf16, #tpu.memory_space<vmem>>, vector<1x1x32x32xbf16>
    %21 = vector.shape_cast %20 : vector<1x1x32x32xbf16> to vector<32x32xbf16>
    %22 = vector.shape_cast %19 : vector<32x32xbf16> to vector<1x1x32x32xbf16>
    tpu.vector_store %arg5[%c0_16, %c2, %c0_17, %c0_18], %22 {strides = array<i32>} : memref<1x4x32x32xbf16, #tpu.memory_space<vmem>>, vector<1x1x32x32xbf16>,
    %23 = vector.extract_strided_slice %3 {offsets = [48, 0], sizes = [16, 32], strides = [1, 1]} : vector<64x32xf32> to vector<16x32xf32>
    %cst_19 = arith.constant dense<0.000000e+00> : vector<32x32xf32>
    %24 = tpu.matmul %4, %23, %cst_19 {dimension_numbers = #tpu.dot_dimension_numbers<[1], [0], [0], [1], [0, 0, 1, 1], [], []>} : vector<32x16xf32>, vector<16x32xf32>, vector<32x32xf32> -> vector<32x32xf32>
    %25 = arith.truncf %24 : vector<32x32xf32> to vector<32x32xbf16>
    %c0_20 = arith.constant 0 : index
    %c3 = arith.constant 3 : index
    %c0_21 = arith.constant 0 : index
    %c0_22 = arith.constant 0 : index
    %26 = vector.load %arg5[%c0_20, %c3, %c0_21, %c0_22] : memref<1x4x32x32xbf16, #tpu.memory_space<vmem>>, vector<1x1x32x32xbf16>
    %27 = vector.shape_cast %26 : vector<1x1x32x32xbf16> to vector<32x32xbf16>
    %28 = vector.shape_cast %25 : vector<32x32xbf16> to vector<1x1x32x32xbf16>
    tpu.vector_store %arg5[%c0_20, %c3, %c0_21, %c0_22], %28 {strides = array<i32>} : memref<1x4x32x32xbf16, #tpu.memory_space<vmem>>, vector<1x1x32x32xbf16>,
    return
  }
  func.func @transform_0(%arg0: i32, %arg1: i32) -> (i32, i32, i32) {
    %c0_i32 = arith.constant 0 : i32
    %c0_i32_0 = arith.constant 0 : i32
    return %arg0, %arg1, %c0_i32 : i32, i32, i32
  }
  func.func @transform_1(%arg0: i32, %arg1: i32) -> (i32, i32) {
    %c0_i32 = arith.constant 0 : i32
    %c0_i32_0 = arith.constant 0 : i32
    %c0_i32_1 = arith.constant 0 : i32
    return %c0_i32, %c0_i32_0 : i32, i32
  }
  func.func @transform_2(%arg0: i32, %arg1: i32) -> (i32, i32) {
    %c0_i32 = arith.constant 0 : i32
    %c0_i32_0 = arith.constant 0 : i32
    %c0_i32_1 = arith.constant 0 : i32
    return %c0_i32, %c0_i32_0 : i32, i32
  }
  func.func @transform_3(%arg0: i32, %arg1: i32) -> (i32, i32, i32, i32) {
    %c0_i32 = arith.constant 0 : i32
    %c0_i32_0 = arith.constant 0 : i32
    %c0_i32_1 = arith.constant 0 : i32
    return %arg0, %arg1, %c0_i32, %c0_i32_0 : i32, i32, i32, i32
  }
}

</mosaic_0001>

<bundles_post_ra>
// kernel: tpu_custom_call.1
= control target key start
LH: loop header
LB: loop body
LE: loop exit
PB: predicated region body
PF: predicated region fallthrough
CT: control target
= control target key end

     0   :  { %8 = vsyncpa [#allocation3], 0  ;;  %s934_s0 = inlined_call_operand.vmem [shape: f32[2,64,16], index: 0, kind: input, shape index: {}]   ;;  %s935_s1 = inlined_call_operand.vmem [shape: f32[32,16], index: 1, kind: input, shape index: {}]   ;;  %s936_s2 = inlined_call_operand.vmem [shape: f32[16,32], index: 2, kind: input, shape index: {}]   ;;  %s937_s3 = inlined_call_operand.hbm [shape: bf16[2,4,32,32], index: 3, kind: output, shape index: {}]  }
   0x1   :  { %10 = vsyncpa [#allocation3 + $0x1], 0  ;;  %s756_s12 = smov 0   ;;  %s758_s13 = smov 0  }
   0x2   :  { %s760_s14 = smov 0   ;;  %s762_s15 = smov 0  }
   0x3   :  { %s764_s16 = smov 0   ;;  %s766_s17 = smov 0  }
   0x4 LB: > { %s542_s18 = sadd.s32 4294967295, %s732_s17   ;;  %s543_s19 = sadd.s32 4294967294, %s732_s17   ;;  %s732_s17 = sphi %s766_s17, %s16_s17   ;;  %s728_s16 = sphi %s764_s16, %s944_s16   ;;  %s724_s15 = sphi %s762_s15, %s943_s15   ;;  %s720_s14 = sphi %s760_s14, %s942_s14   ;;  %s716_s13 = sphi %s758_s13, %s941_s13   ;;  %s712_s12 = sphi %s756_s12, %s940_s12  }
   0x5   : > { %s28_s20 = sadd.s32 1, %s728_s16  ;;  %s107_s21 = sadd.s32 1, %s720_s14 }
   0x6   : > { %p30_p0 = scmp.ge.s32.totalorder %s28_s20, 2  ;;  %p117_p1 = scmp.ne.s32.totalorder %s720_s14, %s716_s13 }
   0x7   : > { %p118_p2 = scmp.eq.s32.totalorder %s542_s18, 1  ;;  %p123_p3 = scmp.ne.s32.totalorder %s716_s13, %s712_s12 }
   0x8   : > { %s946_s20 = smov (%p30_p0, %s28_s20), 0  ;;  %p124_p5 = scmp.eq.s32.totalorder %s543_s19, 1 }
   0x9   : > { %p796_p4 = por %p118_p2, %p117_p1  ;;  %s102_s23 = ssub.s32 %s728_s16, %s946_s20 }
   0xa   : > { %p546_p6 = scmp.ge.s32.totalorder %s732_s17, 1  ;;  %p105_p7 = scmp.eq.s32.totalorder %s102_s23, 0 }
   0xb   : > { %p803_p8 = por %p124_p5, %p123_p3  ;;  %p161_p9 = scmp.lt.s32.totalorder %s732_s17, 3 }
   0xc   : > { %s809_s25 = scalar_select %p105_p7, %s720_s14, %s107_s21  }
   0xd   : > { %p162_p10 = pnand %p546_p6, %p161_p9 }
   0xe   : > { %p190_p11 = scmp.lt.s32.totalorder (!%p162_p10), %s724_s15, 1  ;;  %s186_s26 = sand.u32 (!%p162_p10), 1, %s716_s13  }
   0xf   : > { %165 = sbr.rel (%p162_p10) target bundleno = 356 (0x164), region = 32  ;;  %s547_s27 = sshll.u32 (!%p162_p10), %s186_s26, 6 }
  0x10   : > { %s861_s28 = scalar_lea.vmem (!%p162_p10), [#allocation2], %s547_s27  ;;  %s592_s29 = sshll.u32 (!%p162_p10), %s724_s15, 6 }
  0x11   : > { %s459_s5 = scalar_lea.hbm (!%p162_p10), %s937_s3, %s592_s29  ;;  %s460_s6 = sshll.u32 (!%p162_p10), %s861_s28, 4  ;;  %s461_s6 = int_to_ptr.vmem [resolvable:$true] %s460_s6 }
  0x12   : > { %s445_s8 = scalar_lea.sflag (!%p162_p10), [#allocation3], %s186_s26  ;;  %s674_s18 = scalar_lea.hbm (!%p162_p10), %s937_s3, 128 }
  0x14   : > { %v209_v0 = vld [vmem:[%s936_s2 + $0x8] sm:$0xff]  ;;  %v208_v1 = vld [vmem:[%s936_s2] sm:$0xff]  ;;  %s191_s30 = scalar_select %p190_p11, %s724_s15, 1  ;;  %vm210_vm0 = vcmask 130048   ;;  %v278_v13 = vld [vmem:[%s935_s1 + $0x10] sm:$0xff]  ;;  %vm325_vm1 = vcmask 257024  }
  0x15   : > { %249 = vmatpush.msra.mxu0 %v209_v0  ;;  %593 = vmatpush.msra.mxu2 %v209_v0  ;;  %v276_v14 = vld [vmem:[%s935_s1] sm:$0xff]  ;;  %v279_v17 = vld [vmem:[%s935_s1 + $0x18] sm:$0xff]  ;;  %v277_v18 = vld [vmem:[%s935_s1 + $0x8] sm:$0xff] }
  0x16   : > { %s591_s4 = sshll.u32 %s191_s30, 6 }
  0x17   : > { %250 = vmatpush.msra.mxu0 %v208_v1  ;;  %594 = vmatpush.msra.mxu2 %v208_v1  ;;  %s197_s7 = scalar_lea.vmem %s934_s0, %s591_s4 }
  0x18   : > { %v200_v2 = vld [vmem:[%s197_s7] sm:$0xff]  ;;  %v206_v3 = vld [vmem:[%s197_s7 + $0x30] sm:$0xff]  ;;  %v201_v4 = vld [vmem:[%s197_s7 + $0x8] sm:$0xff] }
  0x19   : > { %550 = vmatmul.msk.f32.vlgmr.msra.gmra.mxu0 %vm210_vm0, %v200_v2  ;;  %556 = vmatmul.msk.f32.vlgmr.msra.gmra.mxu2 %vm210_vm0, %v206_v3  ;;  %v207_v5 = vld [vmem:[%s197_s7 + $0x38] sm:$0xff]  ;;  %v202_v6 = vld [vmem:[%s197_s7 + $0x10] sm:$0xff]  ;;  %v204_v8 = vld [vmem:[%s197_s7 + $0x20] sm:$0xff] }
  0x1a   : > { %v203_v7 = vld [vmem:[%s197_s7 + $0x18] sm:$0xff]  ;;  %v205_v9 = vld [vmem:[%s197_s7 + $0x28] sm:$0xff]  ;;  %s462_s7 = sshll.u32 %s459_s5, 4  ;;  %s463_s7 = int_to_ptr.hbm [resolvable:$true] %s462_s7 }
  0x1b   : > { %s668_s15 = sshra.s32 %s463_s7, 4  ;;  %s669_s15 = int_to_ptr.hbm [resolvable:$true] %s668_s15 }
  0x1c   : > { %s670_s9 = scalar_lea.hbm %s669_s15, 64  ;;  %p675_p1 = scmp.lt.s32.totalorder %s669_s15, %s937_s3 }
  0x1d   : > { %p671_p12 = scmp.ne.s32.totalorder %s669_s15, %s670_s9  ;;  %p676_p2 = scmp.lt.s32.totalorder %s674_s18, %s670_s9 }
  0x1f   : > { %p672_p13 = pnand %p671_p12, %p796_p4  ;;  %p677_p3 = por %p676_p2, %p675_p1 }
  0x21   : > { %551 = vmatmul.msk.f32.gmra.mxu0 %vm210_vm0, %v201_v4  ;;  %557 = vmatmul.msk.f32.gmra.mxu2 %vm210_vm0, %v207_v5  ;;  %p673_p0 = pneg %p672_p13 }
  0x23   : > { %p678_p5 = pnand %p677_p3, %p673_p0 }
  0x29   : > { %552 = vmatmul.msk.f32.gmra.mxu0 %vm210_vm0, %v202_v6 }
  0x31   : > { %553 = vmatmul.msk.f32.gmra.mxu0 %vm210_vm0, %v203_v7 }
  0x39   : > { %554 = vmatmul.msk.f32.gmra.mxu0 %vm210_vm0, %v204_v8 }
  0x41   : > { %555 = vmatmul.msk.f32.gmra.mxu0 %vm210_vm0, %v205_v9 }
  0x96   : > { %v252_v10 = vpop.f32.mrf.mxu0 }
  0x9c   : > { %v270_v11 = vpop.f32.mrf.mxu2 }
  0x9e   : > { %v255_v12 = vpop.f32.mrf.mxu0 }
  0x9f   : > { %306 = vmatpush.msra.mxu1 %v255_v12  ;;  %595 = vmatpush.msra.mxu3 %v255_v12 }
  0xa1   : > { %307 = vmatpush.msra.mxu1 %v252_v10  ;;  %596 = vmatpush.msra.mxu3 %v252_v10 }
  0xa2   : > { %560 = vmatmul.msk.f32.vlgmr.msra.gmra.mxu3 %vm210_vm0, %v278_v13  ;;  %558 = vmatmul.msk.f32.vlgmr.msra.gmra.mxu1 %vm210_vm0, %v276_v14 }
  0xa4   : > { %v273_v15 = vpop.f32.mrf.mxu2 }
  0xa5   : > { %420 = vmatpush.msrb.mxu1 %v273_v15 }
  0xa6   : > { %v258_v16 = vpop.f32.mrf.mxu0 }
  0xa7   : > { %421 = vmatpush.msrb.mxu1 %v270_v11 }
  0xaa   : > { %561 = vmatmul.msk.f32.gmra.mxu3 %vm210_vm0, %v279_v17  ;;  %559 = vmatmul.msk.f32.gmra.mxu1 %vm210_vm0, %v277_v18 }
  0xae   : > { %v261_v19 = vpop.f32.mrf.mxu0 }
  0xaf   : > { %344 = vmatpush.msrb.mxu2 %v261_v19 }
  0xb1   : > { %345 = vmatpush.msrb.mxu2 %v258_v16 }
  0xb2   : > { %562 = vmatmul.msk.f32.vlgmr.msrb.gmra.mxu2 %vm210_vm0, %v276_v14  ;;  %578 = vmatmul.msk.f32.vlgmr.msrb.gmra.mxu1 %vm210_vm0, %v276_v14 }
  0xb6   : > { %v264_v20 = vpop.f32.mrf.mxu0 }
  0xba   : > { %563 = vmatmul.msk.f32.gmra.mxu2 %vm210_vm0, %v277_v18  ;;  %579 = vmatmul.msk.f32.gmra.mxu1 %vm210_vm0, %v277_v18 }
  0xbe   : > { %v267_v21 = vpop.f32.mrf.mxu0 }
  0xbf   : > { %382 = vmatpush.msrb.mxu3 %v267_v21 }
  0xc1   : > { %383 = vmatpush.msrb.mxu3 %v264_v20 }
  0xc2   : > { %570 = vmatmul.msk.f32.vlgmr.msrb.gmra.mxu3 %vm210_vm0, %v276_v14  ;;  %564 = vmatmul.msk.f32.gmra.mxu2 %vm210_vm0, %v278_v13 }
  0xc3   : > { %580 = vmatmul.msk.f32.gmra.mxu1 %vm210_vm0, %v278_v13 }
  0xca   : > { %571 = vmatmul.msk.f32.gmra.mxu3 %vm210_vm0, %v277_v18  ;;  %565 = vmatmul.msk.f32.gmra.mxu2 %vm210_vm0, %v279_v17 }
  0xcb   : > { %581 = vmatmul.msk.f32.gmra.mxu1 %vm210_vm0, %v279_v17 }
  0xd2   : > { %572 = vmatmul.msk.f32.gmra.mxu3 %vm210_vm0, %v278_v13 }
  0xda   : > { %573 = vmatmul.msk.f32.gmra.mxu3 %vm210_vm0, %v279_v17 }
 0x11f   : > { %v309_v22 = vpop.f32.mrf.mxu1 }
 0x120   : > { %v321_v23 = vpack.c.bf16 %v309_v22, %v309_v22 }
 0x122   : > { %326 = vst.msk [vmem:[%s861_s28] sm:$0xf] %vm325_vm1, %v321_v23 }
 0x125   : > { %v315_v24 = vpop.f32.mrf.mxu3 }
 0x126   : > { %v323_v25 = vpack.c.bf16 %v315_v24, %v315_v24 }
 0x127   : > { %v312_v26 = vpop.f32.mrf.mxu1 }
 0x128   : > { %328 = vst.msk [vmem:[%s861_s28 + $0x8] sm:$0xf] %vm325_vm1, %v323_v25  ;;  %v322_v27 = vpack.c.bf16 %v312_v26, %v312_v26 }
 0x12a   : > { %327 = vst.msk [vmem:[%s861_s28 + $0x4] sm:$0xf] %vm325_vm1, %v322_v27 }
 0x12d   : > { %v318_v28 = vpop.f32.mrf.mxu3 }
 0x12e   : > { %v324_v29 = vpack.c.bf16 %v318_v28, %v318_v28 }
 0x12f   : > { %v423_v30 = vpop.f32.mrf.mxu1 }
 0x130   : > { %329 = vst.msk [vmem:[%s861_s28 + $0xc] sm:$0xf] %vm325_vm1, %v324_v29  ;;  %v435_v31 = vpack.c.bf16 %v423_v30, %v423_v30 }
 0x132   : > { %582 = vst.msk [vmem:[%s861_s28 + $0x30] sm:$0xf] %vm325_vm1, %v435_v31 }
 0x135   : > { %v347_v32 = vpop.f32.mrf.mxu2 }
 0x136   : > { %v359_v33 = vpack.c.bf16 %v347_v32, %v347_v32 }
 0x137   : > { %v426_v34 = vpop.f32.mrf.mxu1 }
 0x138   : > { %566 = vst.msk [vmem:[%s861_s28 + $0x10] sm:$0xf] %vm325_vm1, %v359_v33  ;;  %v436_v35 = vpack.c.bf16 %v426_v34, %v426_v34 }
 0x13a   : > { %583 = vst.msk [vmem:[%s861_s28 + $0x34] sm:$0xf] %vm325_vm1, %v436_v35 }
 0x13d   : > { %v350_v36 = vpop.f32.mrf.mxu2 }
 0x13e   : > { %v360_v37 = vpack.c.bf16 %v350_v36, %v350_v36 }
 0x140   : > { %567 = vst.msk [vmem:[%s861_s28 + $0x14] sm:$0xf] %vm325_vm1, %v360_v37  ;;  %v429_v38 = vpop.f32.mrf.mxu1 }
 0x141   : > { %v437_v39 = vpack.c.bf16 %v429_v38, %v429_v38 }
 0x143   : > { %584 = vst.msk [vmem:[%s861_s28 + $0x38] sm:$0xf] %vm325_vm1, %v437_v39 }
 0x145   : > { %v385_v40 = vpop.f32.mrf.mxu3  ;;  %v353_v41 = vpop.f32.mrf.mxu2 }
 0x146   : > { %v397_v42 = vpack.c.bf16 %v385_v40, %v385_v40  ;;  %v361_v43 = vpack.c.bf16 %v353_v41, %v353_v41 }
 0x148   : > { %574 = vst.msk [vmem:[%s861_s28 + $0x20] sm:$0xf] %vm325_vm1, %v397_v42  ;;  %v432_v44 = vpop.f32.mrf.mxu1 }
 0x149   : > { %568 = vst.msk [vmem:[%s861_s28 + $0x18] sm:$0xf] %vm325_vm1, %v361_v43  ;;  %v438_v45 = vpack.c.bf16 %v432_v44, %v432_v44 }
 0x14b   : > { %585 = vst.msk [vmem:[%s861_s28 + $0x3c] sm:$0xf] %vm325_vm1, %v438_v45 }
 0x14d   : > { %v388_v46 = vpop.f32.mrf.mxu3  ;;  %v356_v47 = vpop.f32.mrf.mxu2 }
 0x14e   : > { %v398_v48 = vpack.c.bf16 %v388_v46, %v388_v46  ;;  %v362_v49 = vpack.c.bf16 %v356_v47, %v356_v47 }
 0x150   : > { %575 = vst.msk [vmem:[%s861_s28 + $0x24] sm:$0xf] %vm325_vm1, %v398_v48 }
 0x151   : > { %569 = vst.msk [vmem:[%s861_s28 + $0x1c] sm:$0xf] %vm325_vm1, %v362_v49 }
 0x155   : > { %v391_v50 = vpop.f32.mrf.mxu3 }
 0x156   : > { %v399_v51 = vpack.c.bf16 %v391_v50, %v391_v50 }
 0x158   : > { %576 = vst.msk [vmem:[%s861_s28 + $0x28] sm:$0xf] %vm325_vm1, %v399_v51 }
 0x15d   : > { %v394_v52 = vpop.f32.mrf.mxu3 }
 0x15e   : > { %v400_v53 = vpack.c.bf16 %v394_v52, %v394_v52 }
 0x160   : > { %577 = vst.msk [vmem:[%s861_s28 + $0x2c] sm:$0xf] %vm325_vm1, %v400_v53 }
 0x161   : > { %681 = shalt.err (!%p678_p5)
}
 0x162   : > { %s734_s23 = smov 64   ;;  %s735_s26 = smov 4  }
 0x163   : > { %597 = dma.vmem_to_hbm [thread:$0]  (%p796_p4), %s461_s6, 1024, %s463_s7, %s445_s8, %s734_s23, %s734_s23, %s735_s26  }
 0x164 PF: > { %p603_p6 = scmp.ge.s32.totalorder %s732_s17, 2  ;;  %s477_s27 = sand.u32 1, %s712_s12  }
 0x165   : > { %s478_s28 = scalar_lea.sflag [#allocation3], %s477_s27 }
 0x166   : > { %p600_p7 = pnand %p603_p6, %p803_p8 }
 0x168   : > { %p601_p9 = pneg %p600_p7 }
 0x16a   : > { %707 = dma.done.wait (%p601_p9), %s478_s28, 1024  }
 0x16b   : > { %709 = vsyncadd (%p601_p9), %s478_s28, 4294966272  ;;  %s16_s17 = sadd.s32 1, %s732_s17   ;;  %s940_s12 = smov %s716_s13 }
 0x16c   : > { %p13_p10 = scmp.ge.s32.totalorder %s16_s17, 4   ;;  %s941_s13 = smov %s720_s14 }
 0x16d   : > { %s942_s14 = smov %s809_s25  ;;  %s943_s15 = smov %s728_s16 }
 0x16e   : > { %s944_s16 = smov %s946_s20  ;;  %15 = sbr.rel (!%p13_p10) target bundleno = 4 (0x4), region = 70 }
 0x173   :  { %484 = vsyncpa [#allocation3], 1 }
 0x174   :  { %486 = vsyncpa [#allocation3 + $0x1], 1 }

</bundles_post_ra>
